<compile_context>
chip_gen: v6e
topology: v6e:2x2x1
jax: 0.10.0
libtpu: 0.0.40
codegen_flags: <defaults>
</compile_context>

<pallas_src>
import functools

import jax
import jax.numpy as jnp
from jax.experimental import pallas as pl
from jax.experimental.pallas import tpu as pltpu


# ----------------------------- fused Pallas kernel -----------------------------

def _mtgc_fused_kernel(xs_ref, slab_ref, xm_ref, mulv_ref, *, layout, KN):
    f32 = jnp.float32

    def p(name):
        off, r, c = layout[name]          # static python ints -> free .at-style view
        return slab_ref[off:off + r, 0:c]

    def mm(a, w):
        return jnp.dot(a, w, preferred_element_type=f32)

    xs = xs_ref[...]                      # (B, 2*K*N): lanes [0:KN]=x, [KN:2KN]=support
    x_flat = xs[:, :KN]                   # 128-aligned lane slice (KN = 128 here)

    # conv -> gcn -> fusion (both branches) folded into ONE affine.
    # TODO(synk): Convolutinon1D / GraphConvolution reconstructed as
    # x@W_conv+b and (x@adj)@W_gcn+b; fold is exact for that reconstruction.
    he3 = jnp.maximum(mm(xs, p("w_front")) + p("b_front"), 0.0)          # (B, N)

    # VAE encoder.
    enc = jnp.maximum(mm(he3, p("enc_w")) + p("enc_b"), 0.0)             # (B, H)

    # mu/logvar side branch (off the decoder critical path).
    mulv = mm(enc, p("mulv_w")) + p("mulv_b")                            # (B, 2V)

    # Decoder critical path: z = mu folded into enc->dec1; dec2->gcn_d->tconv folded.
    dec = jnp.maximum(mm(enc, p("w_enc_dec")) + p("b_enc_dec"), 0.0)     # (B, H)
    xre = mm(dec, p("w_dec_out")) + p("b_dec_out")                       # (B, K*N) time-major

    # Squared reconstruction error (same flat layout as the raw input).
    delta = xre - x_flat
    delta = delta * delta

    # Discriminator: [graph-agg(delta), x, logvar] -> hidden relu -> sigmoid mask.
    # TODO(synk): Discriminator reconstructed; delta graph aggregation (@adj per
    # timestep) is pre-folded into disc_wd, logvar block zero-padded to consume
    # mulv whole (no in-kernel lane slice at V).
    d_h = (mm(delta, p("disc_wd"))
           + mm(x_flat, p("disc_wx"))
           + mm(mulv, p("disc_wmulv"))
           + p("disc1_b"))
    d_h = jnp.maximum(d_h, 0.0)
    mask = jax.nn.sigmoid(mm(d_h, p("disc2_w")) + p("disc2_b"))          # (B, K*N)

    # 128-aligned lane-dense stores: [xre | mask] in one buffer, mulv in the other.
    xm_ref[:, :KN] = xre.astype(xm_ref.dtype)
    xm_ref[:, KN:] = mask.astype(xm_ref.dtype)
    mulv_ref[...] = mulv.astype(mulv_ref.dtype)


# ----------------------------- parameter init -----------------------------

def init_params(key, node_num, kernel_size, re_hidden, dis_hidden, vi_feature):
    N, K, H, Dh, V = node_num, kernel_size, re_hidden, dis_hidden, vi_feature
    shapes = {
        # Conv1d(N, N, K) on permuted input ==> matmul on node-major flat (N*K):
        # row index n*K + t.  TODO(synk): if real torch Conv1d weights are
        # loaded, flatten as w[o, n, t] -> [n*K+t, o].
        "x_conv_w": (N * K, N), "x_conv_b": (N,),
        "s_conv_w": (N * K, N), "s_conv_b": (N,),
        "x_gcn_w": (N, N), "x_gcn_b": (N,),
        "s_gcn_w": (N, N), "s_gcn_b": (N,),
        "fusion_w": (2 * N, N), "fusion_b": (N,),
        # VAE
        "vae_enc_w": (N, H), "vae_enc_b": (H,),
        "vae_mu_w": (H, V), "vae_mu_b": (V,),
        "vae_lv_w": (H, V), "vae_lv_b": (V,),
        "vae_dec1_w": (V, H), "vae_dec1_b": (H,),
        "vae_dec2_w": (H, N), "vae_dec2_b": (N,),
        "gcn_d_w": (N, N), "gcn_d_b": (N,),
        # ConvTranspose1d(N, N, K) on (B, N, 1) ==> matmul to node-major flat (N*K)
        "tconv_w": (N, N * K), "tconv_b": (N,),
        # Discriminator: [graph-agg(delta), x, logvar] -> hidden -> sigmoid mask
        "disc1_w": (2 * K * N + V, Dh), "disc1_b": (Dh,),
        "disc2_w": (Dh, K * N), "disc2_b": (K * N,),
    }
    params = {}
    keys = jax.random.split(key, len(shapes))
    for k, (name, shp) in zip(keys, sorted(shapes.items())):
        params[name] = 0.1 * jax.random.normal(k, shp, jnp.float32)
    return params


# ----------------------------- offline weight folding -----------------------------

def prepare_params(params, adj, kernel_size):
    """One-time exact folding of consecutive affine layers + packing into one slab."""
    f32 = jnp.float32
    adj = adj.astype(f32)
    p = {k: v.astype(f32) for k, v in params.items()}
    N = adj.shape[0]
    K = kernel_size
    KN = K * N
    H = p["vae_enc_w"].shape[1]
    V = p["vae_mu_w"].shape[1]
    Dh = p["disc1_w"].shape[1]
    row = lambda b: b.reshape(1, -1)

    # node-major (n*K+t) <-> time-major (t*N+n) re-indexing of flat axes.
    def nm2tm_rows(w):                              # (N*K, C) rows
        c = w.shape[1]
        return w.reshape(N, K, c).transpose(1, 0, 2).reshape(K * N, c)

    def nm2tm_cols(w):                              # (R, N*K) cols
        r = w.shape[0]
        return w.reshape(r, N, K).transpose(0, 2, 1).reshape(r, K * N)

    # --- Front fold: conv -> (x@adj)@W_gcn -> fusion, both branches, time-major rows.
    ax = adj @ p["x_gcn_w"]
    as_ = adj @ p["s_gcn_w"]
    fx = p["fusion_w"][:N]
    fs = p["fusion_w"][N:]
    w_front = jnp.concatenate(
        [nm2tm_rows(p["x_conv_w"] @ ax @ fx),
         nm2tm_rows(p["s_conv_w"] @ as_ @ fs)], axis=0)                   # (2KN, N)
    b_front = row((p["x_conv_b"] @ ax + p["x_gcn_b"]) @ fx
                  + (p["s_conv_b"] @ as_ + p["s_gcn_b"]) @ fs
                  + p["fusion_b"])

    # --- mu/logvar heads (single side matmul).
    mulv_w = jnp.concatenate([p["vae_mu_w"], p["vae_lv_w"]], axis=1)      # (H, 2V)
    mulv_b = row(jnp.concatenate([p["vae_mu_b"], p["vae_lv_b"]]))

    # --- Decoder critical path: z = mu folded into enc->dec1 (mode='test' exact).
    w_enc_dec = p["vae_mu_w"] @ p["vae_dec1_w"]                           # (H, H)
    b_enc_dec = row(p["vae_mu_b"] @ p["vae_dec1_w"] + p["vae_dec1_b"])

    # --- dec2 -> gcn_d -> tconv folded into one (H, K*N) affine, time-major cols.
    agd = adj @ p["gcn_d_w"]
    w_dec_out = nm2tm_cols(p["vae_dec2_w"] @ agd @ p["tconv_w"])          # (H, KN)
    b_dec_out_nm = ((p["vae_dec2_b"] @ agd + p["gcn_d_b"]) @ p["tconv_w"]
                    + jnp.repeat(p["tconv_b"], K))
    b_dec_out = nm2tm_cols(row(b_dec_out_nm))

    # --- Discriminator: delta graph aggregation folded into disc_wd (time-major),
    #     logvar block zero-padded so the kernel consumes mulv whole.
    wd = p["disc1_w"][:KN].reshape(K, N, Dh)
    disc_wd = jnp.einsum("nm,kmh->knh", adj, wd).reshape(KN, Dh)
    disc_wx = p["disc1_w"][KN:2 * KN]
    disc_wmulv = jnp.concatenate([jnp.zeros((V, Dh), f32),
                                  p["disc1_w"][2 * KN:]], axis=0)          # (2V, Dh)
    disc1_b = row(p["disc1_b"])
    disc2_w = p["disc2_w"]
    disc2_b = row(p["disc2_b"])

    blocks = [
        ("w_front", w_front), ("b_front", b_front),
        ("enc_w", p["vae_enc_w"]), ("enc_b", row(p["vae_enc_b"])),
        ("mulv_w", mulv_w), ("mulv_b", mulv_b),
        ("w_enc_dec", w_enc_dec), ("b_enc_dec", b_enc_dec),
        ("w_dec_out", w_dec_out), ("b_dec_out", b_dec_out),
        ("disc_wd", disc_wd), ("disc_wx", disc_wx),
        ("disc_wmulv", disc_wmulv), ("disc1_b", disc1_b),
        ("disc2_w", disc2_w), ("disc2_b", disc2_b),
    ]

    # Pack everything into one lane-padded (rows, lanes) f32 slab; blocks start on
    # 8-row (sublane) boundaries so every in-kernel view is tile-aligned.
    max_c = max(w.shape[1] for _, w in blocks)
    lanes = 128 * (-(-max_c // 128))
    layout = {}
    rows = 0
    for name, w in blocks:
        r, c = w.shape
        assert c <= lanes
        layout[name] = (rows, r, c)
        rows += (-(-r // 8)) * 8
    slab = jnp.zeros((rows, lanes), f32)
    for name, w in blocks:
        off, r, c = layout[name]
        slab = slab.at[off:off + r, :c].set(w)
    return slab, layout


# ----------------------------- forward pass -----------------------------

def mtgc_forward(slab, x, support, *, layout):
    """Equivalent of MTGC.forward(x, support, mode='test') (non-MVAE path),
    additionally returning (mu, logvar)."""
    B, K, N = x.shape
    KN = K * N
    V = layout["mulv_w"][2] // 2
    H = layout["enc_w"][2]
    Dh = layout["disc_wd"][2]

    # No transposes in the wrapper: permutes are folded into the weights.
    xs = jnp.concatenate([x.reshape(B, KN), support.reshape(B, KN)],
                         axis=-1).astype(jnp.float32)                     # (B, 2KN)

    flops = 2 * B * (2 * KN * N + N * H + H * (2 * V) + H * H + H * KN
                     + 2 * KN * Dh + 2 * V * Dh + Dh * KN)
    bytes_accessed = 4 * (xs.size + slab.size + B * 2 * KN + B * 2 * V)
    cost = pl.CostEstimate(flops=flops, transcendentals=B * KN,
                           bytes_accessed=bytes_accessed)

    vmem = pl.BlockSpec(memory_space=pltpu.MemorySpace.VMEM)
    out_shape = (
        jax.ShapeDtypeStruct((B, 2 * KN), jnp.float32),   # [xre | mask], time-major flat
        jax.ShapeDtypeStruct((B, 2 * V), jnp.float32),    # [mu | logvar]
    )
    xm, mulv = pl.pallas_call(
        functools.partial(_mtgc_fused_kernel, layout=layout, KN=KN),
        out_shape=out_shape,
        in_specs=[vmem, vmem],
        out_specs=(vmem, vmem),
        cost_estimate=cost,
    )(xs, slab)

    # Cheap metadata/splitting glue outside the hot kernel.
    x_re = xm[:, :KN].reshape(B, K, N)
    mask_re = xm[:, KN:].reshape(B, K, N)
    mu = mulv[:, :V]
    logvar = mulv[:, V:]
    return x_re, mask_re, mu, logvar


# ----------------------------- unfolded pure-JAX reference -----------------------------

def reference_forward(params, adj, x, support):
    """Layer-by-layer reconstruction of MTGC.forward (mode='test') — validates the folds."""
    f32 = jnp.float32
    B, K, N = x.shape
    p = {k: v.astype(f32) for k, v in params.items()}
    adj = adj.astype(f32)
    xp = jnp.transpose(x, (0, 2, 1)).reshape(B, N * K)
    sp = jnp.transpose(support, (0, 2, 1)).reshape(B, N * K)
    x_he1 = xp @ p["x_conv_w"] + p["x_conv_b"]
    s_he1 = sp @ p["s_conv_w"] + p["s_conv_b"]
    x_he2 = (x_he1 @ adj) @ p["x_gcn_w"] + p["x_gcn_b"]
    s_he2 = (s_he1 @ adj) @ p["s_gcn_w"] + p["s_gcn_b"]
    he2 = jnp.concatenate([x_he2, s_he2], axis=-1)
    he3 = jax.nn.relu(he2 @ p["fusion_w"] + p["fusion_b"])
    enc = jax.nn.relu(he3 @ p["vae_enc_w"] + p["vae_enc_b"])
    mu = enc @ p["vae_mu_w"] + p["vae_mu_b"]
    logvar = enc @ p["vae_lv_w"] + p["vae_lv_b"]
    z = mu                                                     # mode='test'
    dec = jax.nn.relu(z @ p["vae_dec1_w"] + p["vae_dec1_b"])
    hed = dec @ p["vae_dec2_w"] + p["vae_dec2_b"]
    hd1 = (hed @ adj) @ p["gcn_d_w"] + p["gcn_d_b"]
    xre_nm = hd1 @ p["tconv_w"] + jnp.repeat(p["tconv_b"], K)
    x_re = jnp.transpose(xre_nm.reshape(B, N, K), (0, 2, 1))
    delta = (x_re - x) ** 2
    delta_g = jnp.einsum("bkn,nm->bkm", delta, adj).reshape(B, K * N)
    d_in = jnp.concatenate([delta_g, x.reshape(B, K * N), logvar], axis=-1)
    d_h = jax.nn.relu(d_in @ p["disc1_w"] + p["disc1_b"])
    mask_re = jax.nn.sigmoid(d_h @ p["disc2_w"] + p["disc2_b"]).reshape(B, K, N)
    return x_re, mask_re, mu, logvar


# ----------------------------- driver -----------------------------

if __name__ == "__main__":
    B, K, N = 2, 8, 16                  # batch, kernel_size (window), node_num
    re_hidden, dis_hidden, vi_feature = 32, 32, 8

    key = jax.random.PRNGKey(0)
    kx, ks, ka, kp = jax.random.split(key, 4)
    x = jax.random.normal(kx, (B, K, N), jnp.float32)
    support = jax.random.normal(ks, (B, K, N), jnp.float32)
    a = jax.random.uniform(ka, (N, N), jnp.float32)
    adj = (a + a.T) / (2.0 * N)         # symmetric, roughly normalized adjacency

    params = init_params(kp, N, K, re_hidden, dis_hidden, vi_feature)
    with jax.default_matmul_precision("float32"):
        slab, layout = prepare_params(params, adj, K)   # one-time folding, not per step

    fwd = jax.jit(functools.partial(mtgc_forward, layout=layout))
    outs = fwd(slab, x, support)
    jax.block_until_ready(outs)
    x_re, mask_re, mu, logvar = outs

    assert x_re.shape == (B, K, N)
    assert mask_re.shape == (B, K, N)
    assert mu.shape == (B, vi_feature)
    assert logvar.shape == (B, vi_feature)
    assert bool(jnp.all(jnp.isfinite(x_re)))
    assert bool(jnp.all((mask_re >= 0.0) & (mask_re <= 1.0)))

    # Validate the offline folds against the unfolded reference.
    with jax.default_matmul_precision("float32"):
        refs = reference_forward(params, adj, x, support)
    for name, got, want in zip(("x_re", "mask_re", "mu", "logvar"), outs, refs):
        err = float(jnp.max(jnp.abs(got - want)))
        scale = float(jnp.max(jnp.abs(want))) + 1e-6
        assert err <= 2e-2 * scale + 1e-4, (name, err, scale)

    print("KERNEL_OK")
</pallas_src>

<mosaic_0001>
module attributes {stable_mosaic.version = 11 : i64} {
  func.func @_mtgc_fused_kernel(%arg0: memref<2x256xf32, #tpu.memory_space<vmem>>, %arg1: memref<728x128xf32, #tpu.memory_space<vmem>>, %arg2: memref<2x256xf32, #tpu.memory_space<vmem>>, %arg3: memref<2x16xf32, #tpu.memory_space<vmem>>) attributes {dimension_semantics = [], scalar_prefetch = 0 : i64, scratch_operands = 0 : i64, tpu.core_type = #tpu.core_type<tc>} {
    %c0 = arith.constant 0 : index
    %c0_0 = arith.constant 0 : index
    %0 = vector.load %arg0[%c0, %c0_0] : memref<2x256xf32, #tpu.memory_space<vmem>>, vector<2x256xf32>
    %1 = vector.extract_strided_slice %0 {offsets = [0, 0], sizes = [2, 128], strides = [1, 1]} : vector<2x256xf32> to vector<2x128xf32>
    %c0_1 = arith.constant 0 : index
    %c0_2 = arith.constant 0 : index
    %2 = vector.load %arg1[%c0_1, %c0_2] : memref<728x128xf32, #tpu.memory_space<vmem>>, vector<256x16xf32>
    %cst = arith.constant dense<0.000000e+00> : vector<2x16xf32>
    %3 = tpu.matmul %0, %2, %cst {dimension_numbers = #tpu.dot_dimension_numbers<[1], [0], [0], [1], [0, 0, 1, 1], [], []>} : vector<2x256xf32>, vector<256x16xf32>, vector<2x16xf32> -> vector<2x16xf32>
    %c256 = arith.constant 256 : index
    %c0_3 = arith.constant 0 : index
    %4 = vector.load %arg1[%c256, %c0_3] : memref<728x128xf32, #tpu.memory_space<vmem>>, vector<1x16xf32>
    %5 = vector.broadcast %4 : vector<1x16xf32> to vector<2x16xf32>
    %6 = arith.addf %3, %5 : vector<2x16xf32>
    %cst_4 = arith.constant 0.000000e+00 : f32
    %7 = vector.broadcast %cst_4 : f32 to vector<2x16xf32>
    %8 = arith.maximumf %6, %7 : vector<2x16xf32>
    %c264 = arith.constant 264 : index
    %c0_5 = arith.constant 0 : index
    %9 = vector.load %arg1[%c264, %c0_5] : memref<728x128xf32, #tpu.memory_space<vmem>>, vector<16x32xf32>
    %cst_6 = arith.constant dense<0.000000e+00> : vector<2x32xf32>
    %10 = tpu.matmul %8, %9, %cst_6 {dimension_numbers = #tpu.dot_dimension_numbers<[1], [0], [0], [1], [0, 0, 1, 1], [], []>} : vector<2x16xf32>, vector<16x32xf32>, vector<2x32xf32> -> vector<2x32xf32>
    %c280 = arith.constant 280 : index
    %c0_7 = arith.constant 0 : index
    %11 = vector.load %arg1[%c280, %c0_7] : memref<728x128xf32, #tpu.memory_space<vmem>>, vector<1x32xf32>
    %12 = vector.broadcast %11 : vector<1x32xf32> to vector<2x32xf32>
    %13 = arith.addf %10, %12 : vector<2x32xf32>
    %cst_8 = arith.constant 0.000000e+00 : f32
    %14 = vector.broadcast %cst_8 : f32 to vector<2x32xf32>
    %15 = arith.maximumf %13, %14 : vector<2x32xf32>
    %c288 = arith.constant 288 : index
    %c0_9 = arith.constant 0 : index
    %16 = vector.load %arg1[%c288, %c0_9] : memref<728x128xf32, #tpu.memory_space<vmem>>, vector<32x16xf32>
    %cst_10 = arith.constant dense<0.000000e+00> : vector<2x16xf32>
    %17 = tpu.matmul %15, %16, %cst_10 {dimension_numbers = #tpu.dot_dimension_numbers<[1], [0], [0], [1], [0, 0, 1, 1], [], []>} : vector<2x32xf32>, vector<32x16xf32>, vector<2x16xf32> -> vector<2x16xf32>
    %c320 = arith.constant 320 : index
    %c0_11 = arith.constant 0 : index
    %18 = vector.load %arg1[%c320, %c0_11] : memref<728x128xf32, #tpu.memory_space<vmem>>, vector<1x16xf32>
    %19 = vector.broadcast %18 : vector<1x16xf32> to vector<2x16xf32>
    %20 = arith.addf %17, %19 : vector<2x16xf32>
    %c328 = arith.constant 328 : index
    %c0_12 = arith.constant 0 : index
    %21 = vector.load %arg1[%c328, %c0_12] : memref<728x128xf32, #tpu.memory_space<vmem>>, vector<32x32xf32>
    %cst_13 = arith.constant dense<0.000000e+00> : vector<2x32xf32>
    %22 = tpu.matmul %15, %21, %cst_13 {dimension_numbers = #tpu.dot_dimension_numbers<[1], [0], [0], [1], [0, 0, 1, 1], [], []>} : vector<2x32xf32>, vector<32x32xf32>, vector<2x32xf32> -> vector<2x32xf32>
    %c360 = arith.constant 360 : index
    %c0_14 = arith.constant 0 : index
    %23 = vector.load %arg1[%c360, %c0_14] : memref<728x128xf32, #tpu.memory_space<vmem>>, vector<1x32xf32>
    %24 = vector.broadcast %23 : vector<1x32xf32> to vector<2x32xf32>
    %25 = arith.addf %22, %24 : vector<2x32xf32>
    %cst_15 = arith.constant 0.000000e+00 : f32
    %26 = vector.broadcast %cst_15 : f32 to vector<2x32xf32>
    %27 = arith.maximumf %25, %26 : vector<2x32xf32>
    %c368 = arith.constant 368 : index
    %c0_16 = arith.constant 0 : index
    %28 = vector.load %arg1[%c368, %c0_16] : memref<728x128xf32, #tpu.memory_space<vmem>>, vector<32x128xf32>
    %cst_17 = arith.constant dense<0.000000e+00> : vector<2x128xf32>
    %29 = tpu.matmul %27, %28, %cst_17 {dimension_numbers = #tpu.dot_dimension_numbers<[1], [0], [0], [1], [0, 0, 1, 1], [], []>} : vector<2x32xf32>, vector<32x128xf32>, vector<2x128xf32> -> vector<2x128xf32>
    %c400 = arith.constant 400 : index
    %c0_18 = arith.constant 0 : index
    %30 = vector.load %arg1[%c400, %c0_18] : memref<728x128xf32, #tpu.memory_space<vmem>>, vector<1x128xf32>
    %31 = vector.broadcast %30 : vector<1x128xf32> to vector<2x128xf32>
    %32 = arith.addf %29, %31 : vector<2x128xf32>
    %33 = arith.subf %32, %1 : vector<2x128xf32>
    %34 = arith.mulf %33, %33 : vector<2x128xf32>
    %c408 = arith.constant 408 : index
    %c0_19 = arith.constant 0 : index
    %35 = vector.load %arg1[%c408, %c0_19] : memref<728x128xf32, #tpu.memory_space<vmem>>, vector<128x32xf32>
    %cst_20 = arith.constant dense<0.000000e+00> : vector<2x32xf32>
    %36 = tpu.matmul %34, %35, %cst_20 {dimension_numbers = #tpu.dot_dimension_numbers<[1], [0], [0], [1], [0, 0, 1, 1], [], []>} : vector<2x128xf32>, vector<128x32xf32>, vector<2x32xf32> -> vector<2x32xf32>
    %c536 = arith.constant 536 : index
    %c0_21 = arith.constant 0 : index
    %37 = vector.load %arg1[%c536, %c0_21] : memref<728x128xf32, #tpu.memory_space<vmem>>, vector<128x32xf32>
    %cst_22 = arith.constant dense<0.000000e+00> : vector<2x32xf32>
    %38 = tpu.matmul %1, %37, %cst_22 {dimension_numbers = #tpu.dot_dimension_numbers<[1], [0], [0], [1], [0, 0, 1, 1], [], []>} : vector<2x128xf32>, vector<128x32xf32>, vector<2x32xf32> -> vector<2x32xf32>
    %39 = arith.addf %36, %38 : vector<2x32xf32>
    %c664 = arith.constant 664 : index
    %c0_23 = arith.constant 0 : index
    %40 = vector.load %arg1[%c664, %c0_23] : memref<728x128xf32, #tpu.memory_space<vmem>>, vector<16x32xf32>
    %cst_24 = arith.constant dense<0.000000e+00> : vector<2x32xf32>
    %41 = tpu.matmul %20, %40, %cst_24 {dimension_numbers = #tpu.dot_dimension_numbers<[1], [0], [0], [1], [0, 0, 1, 1], [], []>} : vector<2x16xf32>, vector<16x32xf32>, vector<2x32xf32> -> vector<2x32xf32>
    %42 = arith.addf %39, %41 : vector<2x32xf32>
    %c680 = arith.constant 680 : index
    %c0_25 = arith.constant 0 : index
    %43 = vector.load %arg1[%c680, %c0_25] : memref<728x128xf32, #tpu.memory_space<vmem>>, vector<1x32xf32>
    %44 = vector.broadcast %43 : vector<1x32xf32> to vector<2x32xf32>
    %45 = arith.addf %42, %44 : vector<2x32xf32>
    %cst_26 = arith.constant 0.000000e+00 : f32
    %46 = vector.broadcast %cst_26 : f32 to vector<2x32xf32>
    %47 = arith.maximumf %45, %46 : vector<2x32xf32>
    %c688 = arith.constant 688 : index
    %c0_27 = arith.constant 0 : index
    %48 = vector.load %arg1[%c688, %c0_27] : memref<728x128xf32, #tpu.memory_space<vmem>>, vector<32x128xf32>
    %cst_28 = arith.constant dense<0.000000e+00> : vector<2x128xf32>
    %49 = tpu.matmul %47, %48, %cst_28 {dimension_numbers = #tpu.dot_dimension_numbers<[1], [0], [0], [1], [0, 0, 1, 1], [], []>} : vector<2x32xf32>, vector<32x128xf32>, vector<2x128xf32> -> vector<2x128xf32>
    %c720 = arith.constant 720 : index
    %c0_29 = arith.constant 0 : index
    %50 = vector.load %arg1[%c720, %c0_29] : memref<728x128xf32, #tpu.memory_space<vmem>>, vector<1x128xf32>
    %51 = vector.broadcast %50 : vector<1x128xf32> to vector<2x128xf32>
    %52 = arith.addf %49, %51 : vector<2x128xf32>
    %53 = arith.negf %52 : vector<2x128xf32>
    %54 = math.exp %53 : vector<2x128xf32>
    %cst_30 = arith.constant 1.000000e+00 : f32
    %55 = vector.broadcast %cst_30 : f32 to vector<2x128xf32>
    %56 = arith.addf %55, %54 : vector<2x128xf32>
    %57 = arith.divf %55, %56 : vector<2x128xf32>
    %c0_31 = arith.constant 0 : index
    %c0_32 = arith.constant 0 : index
    %58 = vector.load %arg2[%c0_31, %c0_32] : memref<2x256xf32, #tpu.memory_space<vmem>>, vector<2x128xf32>
    tpu.vector_store %arg2[%c0_31, %c0_32], %32 {strides = array<i32>} : memref<2x256xf32, #tpu.memory_space<vmem>>, vector<2x128xf32>,
    %c0_33 = arith.constant 0 : index
    %c128 = arith.constant 128 : index
    %59 = vector.load %arg2[%c0_33, %c128] : memref<2x256xf32, #tpu.memory_space<vmem>>, vector<2x128xf32>
    tpu.vector_store %arg2[%c0_33, %c128], %57 {strides = array<i32>} : memref<2x256xf32, #tpu.memory_space<vmem>>, vector<2x128xf32>,
    %c0_34 = arith.constant 0 : index
    %c0_35 = arith.constant 0 : index
    %60 = vector.load %arg3[%c0_34, %c0_35] : memref<2x16xf32, #tpu.memory_space<vmem>>, vector<2x16xf32>
    tpu.vector_store %arg3[%c0_34, %c0_35], %20 {strides = array<i32>} : memref<2x16xf32, #tpu.memory_space<vmem>>, vector<2x16xf32>,
    return
  }
}

</mosaic_0001>

<bundles_post_ra>
// kernel: mtgc_forward.1
= control target key start
LH: loop header
LB: loop body
LE: loop exit
PB: predicated region body
PF: predicated region fallthrough
CT: control target
= control target key end

     0   :  { %9 = vsyncpa [#allocation3], 0  ;;  %s1101_s12 = smov [#allocation2]   ;;  %s1225_s0 = inlined_call_operand.vmem [shape: f32[2,256], index: 0, kind: input, shape index: {}]   ;;  %s1226_s1 = inlined_call_operand.hbm [shape: f32[728,128], index: 1, kind: input, shape index: {}]   ;;  %s1227_s2 = inlined_call_operand.vmem [shape: f32[2,256], index: 2, kind: output, shape index: {0}]   ;;  %s1228_s3 = inlined_call_operand.vmem [shape: f32[2,16], index: 3, kind: output, shape index: {1}]  }
   0x1   :  { %s17_s13 = sshll.u32 %s1101_s12, 4  ;;  %s18_s13 = int_to_ptr.vmem [resolvable:$true] %s17_s13 }
   0x2   :  { %s1087_s14 = scalar_lea.vmem %s18_s13, 11648  ;;  %p1092_p1 = scmp.lt.s32.totalorder %s18_s13, %s18_s13 }
   0x3   :  { %p1088_p0 = scmp.ne.s32.totalorder %s18_s13, %s1087_s14  ;;  %p1093_p2 = scmp.lt.s32.totalorder %s1087_s14, %s1087_s14 }
   0x5   :  { %p1094_p3 = por %p1093_p2, %p1092_p1 }
   0x7   :  { %p1095_p4 = pnand %p1094_p3, %p1088_p0 }
   0x9   :  { %1098 = shalt.err (!%p1095_p4)
}
   0xa   :  { %s1102_s15 = smov 128   ;;  %s1103_s16 = smov 8  }
   0xb   :  { %23 = dma.hbm_to_vmem [thread:$0]  %s1226_s1, 11648, %s18_s13, [#allocation3], %s1102_s15, %s1102_s15, %s1103_s16  }
   0xc   :  { %1099 = dma.done.wait [#allocation3], 11648  }
   0xd   :  { %1100 = vsyncadd [#allocation3], 4294955648  ;;  %v1104_v0 = vmov 1983009808   ;;  %v69_v2 = vlaneseq  ;;  %v59_v3 = vld [vmem:[#allocation2 + $0xf8] sm:$0xff]  ;;  %v58_v5 = vld [vmem:[#allocation2 + $0xf0] sm:$0xff] }
   0xe   :  { %v67_v1 = vunpack.c.l.s4 %v1104_v0  ;;  %v43_v4 = vld [vmem:[#allocation2 + $0x78] sm:$0xff]  ;;  %846 = vmatprep.subr.mxu0 %v59_v3  ;;  %v42_v6 = vld [vmem:[#allocation2 + $0x70] sm:$0xff]  ;;  %v57_v7 = vld [vmem:[#allocation2 + $0xe8] sm:$0xff]  ;;  %v1105_v41 = vmov 0.0   ;;  %vm1106_vm0 = vmmov 0   ;;  %vm154_vm1 = vcmask 130048  }
   0xf   :  { %847 = vmatpush3.msra.mxu0 %v43_v4  ;;  %v41_v8 = vld [vmem:[#allocation2 + $0x68] sm:$0xff]  ;;  %v70_v10 = vshrl.u32 %v69_v2, 7  ;;  %v56_v11 = vld [vmem:[#allocation2 + $0xe0] sm:$0xff]  ;;  %v55_v13 = vld [vmem:[#allocation2 + $0xd8] sm:$0xff]  ;;  %941 = vmatprep.subr.mxu1 %v1105_v41  ;;  %vm238_vm2 = vcmask 261120   ;;  %vm821_vm3 = vcmask 123904  }
  0x10   :  { %848 = vmatprep.subr.mxu0 %v58_v5  ;;  %v68_v9 = vunpack.c.0.s8 %v67_v1  ;;  %v40_v12 = vld [vmem:[#allocation2 + $0x60] sm:$0xff]  ;;  %v39_v14 = vld [vmem:[#allocation2 + $0x58] sm:$0xff]  ;;  %v54_v16 = vld [vmem:[#allocation2 + $0xd0] sm:$0xff]  ;;  %945 = vmatprep.mubr.msk.f32.mxu1 %vm1106_vm0, %v1105_v41 }
  0x11   :  { %849 = vmatpush3.msra.mxu0 %v42_v6  ;;  %v38_v17 = vld [vmem:[#allocation2 + $0x50] sm:$0xff]  ;;  %v53_v18 = vld [vmem:[#allocation2 + $0xc8] sm:$0xff]  ;;  %v1133_v19 = vld [vmem:[%s1225_s0] sm:$0xf] }
  0x12   :  { %850 = vmatprep.subr.mxu0 %v57_v7  ;;  %v71_v15 = vsub.s32 %v68_v9, %v70_v10  ;;  %v37_v20 = vld [vmem:[#allocation2 + $0x48] sm:$0xff]  ;;  %v52_v22 = vld [vmem:[#allocation2 + $0xc0] sm:$0xff]  ;;  %v51_v25 = vld [vmem:[#allocation2 + $0xb8] sm:$0xff] }
  0x13   :  { %851 = vmatpush3.msra.mxu0 %v41_v8  ;;  %v36_v23 = vld [vmem:[#allocation2 + $0x40] sm:$0xff]  ;;  %v35_v26 = vld [vmem:[#allocation2 + $0x38] sm:$0xff]  ;;  %v50_v27 = vld [vmem:[#allocation2 + $0xb0] sm:$0xff] }
  0x14   :  { %852 = vmatprep.subr.mxu0 %v56_v11  ;;  %v72_v21 = vrot.slane %v1133_v19, %v71_v15  ;;  %v34_v28 = vld [vmem:[#allocation2 + $0x30] sm:$0xff]  ;;  %v49_v29 = vld [vmem:[#allocation2 + $0xa8] sm:$0xff]  ;;  %v48_v31 = vld [vmem:[#allocation2 + $0xa0] sm:$0xff] }
  0x15   :  { %853 = vmatpush3.msra.mxu0 %v40_v12  ;;  %v33_v30 = vld [vmem:[#allocation2 + $0x28] sm:$0xff]  ;;  %v32_v32 = vld [vmem:[#allocation2 + $0x20] sm:$0xff]  ;;  %v47_v33 = vld [vmem:[#allocation2 + $0x98] sm:$0xff] }
  0x16   :  { %854 = vmatprep.subr.mxu0 %v55_v13  ;;  %v73_v24 = vcombine.high %v72_v21, %v72_v21  ;;  %v31_v34 = vld [vmem:[#allocation2 + $0x18] sm:$0xff]  ;;  %v46_v35 = vld [vmem:[#allocation2 + $0x90] sm:$0xff]  ;;  %v45_v37 = vld [vmem:[#allocation2 + $0x88] sm:$0xff] }
  0x17   :  { %855 = vmatpush3.msra.mxu0 %v39_v14  ;;  %v30_v36 = vld [vmem:[#allocation2 + $0x10] sm:$0xff]  ;;  %v29_v38 = vld [vmem:[#allocation2 + $0x8] sm:$0xff]  ;;  %v44_v39 = vld [vmem:[#allocation2 + $0x80] sm:$0xff] }
  0x18   :  { %856 = vmatprep.subr.mxu0 %v54_v16  ;;  %140 = vmatprep.mubr.f32.mxu0 %v73_v24  ;;  %v28_v40 = vld [vmem:[#allocation2] sm:$0xff]  ;;  %v148_v42 = vld [vmem:[#allocation2 + $0x110] sm:$0xff]  ;;  %v147_v43 = vld [vmem:[#allocation2 + $0x108] sm:$0xff] }
  0x19   :  { %857 = vmatpush3.msra.mxu0 %v38_v17  ;;  %942 = vmatpush3.msra.mxu1 %v148_v42  ;;  %v832_v45 = vld [vmem:[#allocation2 + $0x100] ss:$0 sm:$0xff]  ;;  %v232_v50 = vld [vmem:[#allocation2 + $0x138] sm:$0xff]  ;;  %v231_v51 = vld [vmem:[#allocation2 + $0x130] sm:$0xff] }
  0x1a   :  { %858 = vmatprep.subr.mxu0 %v53_v18  ;;  %943 = vmatprep.subr.mxu1 %v1105_v41  ;;  %v230_v52 = vld [vmem:[#allocation2 + $0x128] sm:$0xff]  ;;  %v229_v53 = vld [vmem:[#allocation2 + $0x120] sm:$0xff]  ;;  %v833_v54 = vld [vmem:[#allocation2 + $0x118] ss:$0 sm:$0xff] }
  0x1b   :  { %859 = vmatpush3.msra.mxu0 %v37_v20  ;;  %944 = vmatpush3.msra.mxu1 %v147_v43  ;;  %v315_v59 = vld [vmem:[#allocation2 + $0x160] sm:$0xff]  ;;  %v314_v60 = vld [vmem:[#allocation2 + $0x158] sm:$0xff]  ;;  %v313_v61 = vld [vmem:[#allocation2 + $0x150] sm:$0xff] }
  0x1c   :  { %860 = vmatprep.subr.mxu0 %v52_v22  ;;  %948 = vmatprep.subr.mxu1 %v1105_v41  ;;  %v312_v62 = vld [vmem:[#allocation2 + $0x148] sm:$0xff]  ;;  %v394_v0 = vld [vmem:[#allocation2 + $0x180] sm:$0xff]  ;;  %v393_v1 = vld [vmem:[#allocation2 + $0x178] sm:$0xff] }
  0x1d   :  { %861 = vmatpush3.msra.mxu0 %v36_v23  ;;  %v395_v63 = vld [vmem:[#allocation2 + $0x188] sm:$0xff]  ;;  %v392_v2 = vld [vmem:[#allocation2 + $0x170] sm:$0xff]  ;;  %v489_v5 = vld [vmem:[#allocation2 + $0x200] sm:$0xff] }
  0x1e   :  { %862 = vmatprep.subr.mxu0 %v51_v25  ;;  %v491_v3 = vld [vmem:[#allocation2 + $0x210] sm:$0xff]  ;;  %v490_v4 = vld [vmem:[#allocation2 + $0x208] sm:$0xff]  ;;  %v488_v6 = vld [vmem:[#allocation2 + $0x1f8] sm:$0xff] }
  0x1f   :  { %863 = vmatpush3.msra.mxu0 %v35_v26  ;;  %v487_v7 = vld [vmem:[#allocation2 + $0x1f0] sm:$0xff]  ;;  %v486_v8 = vld [vmem:[#allocation2 + $0x1e8] sm:$0xff]  ;;  %v485_v9 = vld [vmem:[#allocation2 + $0x1e0] sm:$0xff] }
  0x20   :  { %864 = vmatprep.subr.mxu0 %v50_v27  ;;  %v484_v10 = vld [vmem:[#allocation2 + $0x1d8] sm:$0xff]  ;;  %v483_v11 = vld [vmem:[#allocation2 + $0x1d0] sm:$0xff]  ;;  %v482_v12 = vld [vmem:[#allocation2 + $0x1c8] sm:$0xff] }
  0x21   :  { %865 = vmatpush3.msra.mxu0 %v34_v28  ;;  %v481_v13 = vld [vmem:[#allocation2 + $0x1c0] sm:$0xff]  ;;  %v480_v14 = vld [vmem:[#allocation2 + $0x1b8] sm:$0xff]  ;;  %v837_v20 = vld [vmem:[#allocation2 + $0x168] ss:$0 sm:$0xff] }
  0x22   :  { %866 = vmatprep.subr.mxu0 %v49_v29  ;;  %v835_v15 = vld [vmem:[#allocation2 + $0x140] ss:$0 sm:$0xff]  ;;  %v507_v25 = vld [vmem:[#allocation2 + $0x290] sm:$0xff]  ;;  %v506_v26 = vld [vmem:[#allocation2 + $0x288] sm:$0xff] }
  0x23   :  { %867 = vmatpush3.msra.mxu0 %v33_v30  ;;  %v505_v27 = vld [vmem:[#allocation2 + $0x280] sm:$0xff]  ;;  %v504_v28 = vld [vmem:[#allocation2 + $0x278] sm:$0xff]  ;;  %v503_v29 = vld [vmem:[#allocation2 + $0x270] sm:$0xff] }
  0x24   :  { %868 = vmatprep.subr.mxu0 %v48_v31  ;;  %v502_v30 = vld [vmem:[#allocation2 + $0x268] sm:$0xff]  ;;  %v501_v31 = vld [vmem:[#allocation2 + $0x260] sm:$0xff]  ;;  %v648_v43 = vld [vmem:[#allocation2 + $0x298] sm:$0xff] }
  0x25   :  { %869 = vmatpush3.msra.mxu0 %v32_v32  ;;  %v500_v32 = vld [vmem:[#allocation2 + $0x258] sm:$0xff]  ;;  %v649_v42 = vld [vmem:[#allocation2 + $0x2a0] sm:$0xff] }
  0x26   :  { %870 = vmatprep.subr.mxu0 %v47_v33  ;;  %v499_v33 = vld [vmem:[#allocation2 + $0x250] sm:$0xff] }
  0x27   :  { %871 = vmatpush3.msra.mxu0 %v31_v34  ;;  %v498_v34 = vld [vmem:[#allocation2 + $0x248] sm:$0xff] }
  0x28   :  { %872 = vmatprep.subr.mxu0 %v46_v35  ;;  %v497_v35 = vld [vmem:[#allocation2 + $0x240] sm:$0xff] }
  0x29   :  { %873 = vmatpush3.msra.mxu0 %v30_v36  ;;  %v496_v36 = vld [vmem:[#allocation2 + $0x238] sm:$0xff] }
  0x2a   :  { %874 = vmatprep.subr.mxu0 %v45_v37  ;;  %v495_v37 = vld [vmem:[#allocation2 + $0x230] sm:$0xff] }
  0x2b   :  { %875 = vmatpush3.msra.mxu0 %v29_v38  ;;  %v494_v38 = vld [vmem:[#allocation2 + $0x228] sm:$0xff] }
  0x2c   :  { %876 = vmatprep.subr.mxu0 %v44_v39  ;;  %v493_v39 = vld [vmem:[#allocation2 + $0x220] sm:$0xff] }
  0x2d   :  { %877 = vmatpush3.msra.mxu0 %v28_v40  ;;  %v492_v40 = vld [vmem:[#allocation2 + $0x218] sm:$0xff] }
  0x2e   :  { %141 = vmatmul.mubr.f32.vlgmr.msra.gmra.mxu0 %v72_v21  ;;  %1016 = vmatprep.subr.mxu0 %v1105_v41 }
  0x2f   :  { %1048 = vmatprep.mubr.msk.f32.mxu0 %vm1106_vm0, %v1105_v41  ;;  %1017 = vmatpush3.msra.mxu0 %v491_v3 }
  0x30   :  { %1018 = vmatprep.subr.mxu0 %v1105_v41 }
  0x31   :  { %1019 = vmatpush3.msra.mxu0 %v490_v4  ;;  %v843_v4 = vld [vmem:[#allocation2 + $0x2d0] ss:$0 sm:$0xff] }
  0x32   :  { %1020 = vmatprep.subr.mxu0 %v1105_v41 }
  0x33   :  { %1021 = vmatpush3.msra.mxu0 %v489_v5 }
  0x34   :  { %1022 = vmatprep.subr.mxu0 %v1105_v41 }
  0x35   :  { %1023 = vmatpush3.msra.mxu0 %v488_v6 }
  0x36   :  { %1024 = vmatprep.subr.mxu0 %v1105_v41 }
  0x37   :  { %1025 = vmatpush3.msra.mxu0 %v487_v7 }
  0x38   :  { %1026 = vmatprep.subr.mxu0 %v1105_v41 }
  0x39   :  { %1027 = vmatpush3.msra.mxu0 %v486_v8 }
  0x3a   :  { %1028 = vmatprep.subr.mxu0 %v1105_v41 }
  0x3b   :  { %1029 = vmatpush3.msra.mxu0 %v485_v9 }
  0x3c   :  { %1030 = vmatprep.subr.mxu0 %v1105_v41 }
  0x3d   :  { %1031 = vmatpush3.msra.mxu0 %v484_v10 }
  0x3e   :  { %1032 = vmatprep.subr.mxu0 %v1105_v41 }
  0x3f   :  { %1033 = vmatpush3.msra.mxu0 %v483_v11 }
  0x40   :  { %1034 = vmatprep.subr.mxu0 %v1105_v41 }
  0x41   :  { %1035 = vmatpush3.msra.mxu0 %v482_v12 }
  0x42   :  { %1036 = vmatprep.subr.mxu0 %v1105_v41 }
  0x43   :  { %1037 = vmatpush3.msra.mxu0 %v481_v13 }
  0x44   :  { %1038 = vmatprep.subr.mxu0 %v1105_v41 }
  0x45   :  { %1039 = vmatpush3.msra.mxu0 %v480_v14 }
  0x46   :  { %1040 = vmatprep.subr.mxu0 %v1105_v41 }
  0xee   :  { %v878_v44 = vpop.f32.mrf.mxu0 }
  0xf0   :  { %v879_v46 = vpop.f32.mrf.mxu0 }
  0xf1   :  { %v880_v47 = vadd.f32 %v879_v46, %v878_v44  ;;  %v479_v44 = vld [vmem:[#allocation2 + $0x1b0] sm:$0xff]  ;;  %v477_v46 = vld [vmem:[#allocation2 + $0x1a0] sm:$0xff] }
  0xf2   :  { %1041 = vmatpush3.msra.mxu0 %v479_v44 }
  0xf3   :  { %v143_v48 = vadd.f32 %v880_v47, %v832_v45  ;;  %1042 = vmatprep.subr.mxu0 %v1105_v41  ;;  %v478_v45 = vld [vmem:[#allocation2 + $0x1a8] sm:$0xff]  ;;  %v476_v47 = vld [vmem:[#allocation2 + $0x198] sm:$0xff] }
  0xf4   :  { %1043 = vmatpush3.msra.mxu0 %v478_v45 }
  0xf5   :  { %v146_v49 = vmax.f32 %v143_v48, 0.0  ;;  %1044 = vmatprep.subr.mxu0 %v1105_v41  ;;  %v839_v48 = vld [vmem:[#allocation2 + $0x190] ss:$0 sm:$0xff] }
  0xf6   :  { %1045 = vmatpush3.msra.mxu0 %v477_v46 }
  0xf7   :  { %946 = vmatmul.mubr.msk.f32.vlgmr.msra.gmra.mxu1 %vm154_vm1, %v146_v49  ;;  %1046 = vmatprep.subr.mxu0 %v1105_v41 }
  0xf8   :  { %949 = vmatpush3.msra.mxu1 %v232_v50  ;;  %956 = vmatprep.mubr.msk.f32.mxu1 %vm1106_vm0, %v1105_v41 }
  0xf9   :  { %950 = vmatprep.subr.mxu1 %v1105_v41  ;;  %1047 = vmatpush3.msra.mxu0 %v476_v47 }
  0xfa   :  { %951 = vmatpush3.msra.mxu1 %v231_v51  ;;  %1058 = vmatprep.subr.mxu0 %v1105_v41 }
  0xfb   :  { %952 = vmatprep.subr.mxu1 %v1105_v41 }
  0xfc   :  { %953 = vmatpush3.msra.mxu1 %v230_v52 }
  0xfd   :  { %954 = vmatprep.subr.mxu1 %v1105_v41 }
  0xfe   :  { %955 = vmatpush3.msra.mxu1 %v229_v53 }
  0xff   :  { %959 = vmatprep.subr.mxu1 %v1105_v41 }
 0x1b7   :  { %v224_v55 = vpop.f32.mrf.mxu1 }
 0x1b8   :  { %v225_v56 = vadd.f32 %v833_v54, %v224_v55 }
 0x1b9   :  { %v947_v57 = vpop.f32.mrf.mxu1 }
 0x1ba   :  { %v228_v58 = vmax.f32 %v225_v56, 0.0 }
 0x1bc   :  { %957 = vmatmul.mubr.msk.f32.vlgmr.msra.gmra.mxu1 %vm238_vm2, %v228_v58 }
 0x1bd   :  { %960 = vmatpush3.msra.mxu1 %v315_v59  ;;  %967 = vmatprep.mubr.msk.f32.mxu1 %vm1106_vm0, %v1105_v41  ;;  %v733_v59 = vld [vmem:[#allocation2 + $0x2c0] sm:$0xff] }
 0x1be   :  { %961 = vmatprep.subr.mxu1 %v1105_v41 }
 0x1bf   :  { %962 = vmatpush3.msra.mxu1 %v314_v60  ;;  %v731_v60 = vld [vmem:[#allocation2 + $0x2b0] sm:$0xff] }
 0x1c0   :  { %963 = vmatprep.subr.mxu1 %v1105_v41 }
 0x1c1   :  { %964 = vmatpush3.msra.mxu1 %v313_v61 }
 0x1c2   :  { %965 = vmatprep.subr.mxu1 %v1105_v41 }
 0x1c3   :  { %966 = vmatpush3.msra.mxu1 %v312_v62 }
 0x1c4   :  { %968 = vmatmul.mubr.msk.f32.vlgmr.msra.gmra.mxu1 %vm238_vm2, %v228_v58  ;;  %970 = vmatprep.subr.mxu1 %v1105_v41  ;;  %v734_v58 = vld [vmem:[#allocation2 + $0x2c8] sm:$0xff] }
 0x1c5   :  { %978 = vmatprep.mubr.msk.f32.mxu1 %vm1106_vm0, %v1105_v41  ;;  %971 = vmatpush3.msra.mxu1 %v395_v63  ;;  %v842_v63 = vld [vmem:[#allocation2 + $0x2a8] ss:$0 sm:$0xff] }
 0x1c6   :  { %972 = vmatprep.subr.mxu1 %v1105_v41 }
 0x1c7   :  { %973 = vmatpush3.msra.mxu1 %v394_v0 }
 0x1c8   :  { %974 = vmatprep.subr.mxu1 %v1105_v41 }
 0x1c9   :  { %975 = vmatpush3.msra.mxu1 %v393_v1 }
 0x1ca   :  { %976 = vmatprep.subr.mxu1 %v1105_v41 }
 0x1cb   :  { %977 = vmatpush3.msra.mxu1 %v392_v2 }
 0x1cc   :  { %981 = vmatprep.subr.mxu1 %v1105_v41 }
 0x27c   :  { %v308_v16 = vpop.f32.mrf.mxu1 }
 0x27d   :  { %v1177_v17 = vadd.f32 %v835_v15, %v308_v16 }
 0x27e   :  { %v958_v18 = vpop.f32.mrf.mxu1 }
 0x27f   :  { %822 = vst.msk [vmem:[%s1228_s3] sm:$0x3] %vm821_vm3, %v1177_v17 }
 0x284   :  { %v387_v21 = vpop.f32.mrf.mxu1 }
 0x285   :  { %v388_v22 = vadd.f32 %v837_v20, %v387_v21 }
 0x286   :  { %v969_v23 = vpop.f32.mrf.mxu1 }
 0x287   :  { %v391_v24 = vmax.f32 %v388_v22, 0.0 }
 0x289   :  { %979 = vmatmul.mubr.msk.f32.vlgmr.msra.gmra.mxu1 %vm238_vm2, %v391_v24 }
 0x28a   :  { %982 = vmatpush3.msra.mxu1 %v507_v25  ;;  %1013 = vmatprep.mubr.msk.f32.mxu1 %vm1106_vm0, %v1105_v41 }
 0x28b   :  { %983 = vmatprep.subr.mxu1 %v1105_v41 }
 0x28c   :  { %984 = vmatpush3.msra.mxu1 %v506_v26 }
 0x28d   :  { %985 = vmatprep.subr.mxu1 %v1105_v41 }
 0x28e   :  { %986 = vmatpush3.msra.mxu1 %v505_v27 }
 0x28f   :  { %987 = vmatprep.subr.mxu1 %v1105_v41 }
 0x290   :  { %988 = vmatpush3.msra.mxu1 %v504_v28 }
 0x291   :  { %989 = vmatprep.subr.mxu1 %v1105_v41 }
 0x292   :  { %990 = vmatpush3.msra.mxu1 %v503_v29 }
 0x293   :  { %991 = vmatprep.subr.mxu1 %v1105_v41 }
 0x294   :  { %992 = vmatpush3.msra.mxu1 %v502_v30 }
 0x295   :  { %993 = vmatprep.subr.mxu1 %v1105_v41 }
 0x296   :  { %994 = vmatpush3.msra.mxu1 %v501_v31 }
 0x297   :  { %995 = vmatprep.subr.mxu1 %v1105_v41 }
 0x298   :  { %996 = vmatpush3.msra.mxu1 %v500_v32 }
 0x299   :  { %997 = vmatprep.subr.mxu1 %v1105_v41 }
 0x29a   :  { %998 = vmatpush3.msra.mxu1 %v499_v33 }
 0x29b   :  { %999 = vmatprep.subr.mxu1 %v1105_v41 }
 0x29c   :  { %1000 = vmatpush3.msra.mxu1 %v498_v34 }
 0x29d   :  { %1001 = vmatprep.subr.mxu1 %v1105_v41 }
 0x29e   :  { %1002 = vmatpush3.msra.mxu1 %v497_v35 }
 0x29f   :  { %1003 = vmatprep.subr.mxu1 %v1105_v41 }
 0x2a0   :  { %1004 = vmatpush3.msra.mxu1 %v496_v36 }
 0x2a1   :  { %1005 = vmatprep.subr.mxu1 %v1105_v41 }
 0x2a2   :  { %1006 = vmatpush3.msra.mxu1 %v495_v37 }
 0x2a3   :  { %1007 = vmatprep.subr.mxu1 %v1105_v41 }
 0x2a4   :  { %1008 = vmatpush3.msra.mxu1 %v494_v38 }
 0x2a5   :  { %1009 = vmatprep.subr.mxu1 %v1105_v41 }
 0x2a6   :  { %1010 = vmatpush3.msra.mxu1 %v493_v39 }
 0x2a7   :  { %1011 = vmatprep.subr.mxu1 %v1105_v41 }
 0x2a8   :  { %1012 = vmatpush3.msra.mxu1 %v492_v40 }
 0x2a9   :  { %1014 = vmatmul.mubr.f32.vlgmr.msra.gmra.mxu1 %v1133_v19  ;;  %1051 = vmatprep.subr.mxu1 %v1105_v41 }
 0x2aa   :  { %1052 = vmatpush3.msra.mxu1 %v649_v42  ;;  %1055 = vmatprep.mubr.msk.f32.mxu1 %vm1106_vm0, %v1105_v41 }
 0x2ab   :  { %1053 = vmatprep.subr.mxu1 %v1105_v41 }
 0x2ac   :  { %1054 = vmatpush3.msra.mxu1 %v648_v43 }
 0x2ad   :  { %1056 = vmatmul.mubr.msk.f32.vlgmr.msra.gmra.mxu1 %vm154_vm1, %v1177_v17 }
 0x349   :  { %v470_v49 = vpop.f32.mrf.mxu1 }
 0x34a   :  { %v471_v50 = vadd.f32 %v839_v48, %v470_v49 }
 0x34b   :  { %v980_v51 = vpop.f32.mrf.mxu1 }
 0x34c   :  { %v474_v52 = vsub.f32 %v471_v50, %v1133_v19  ;;  %819 = vst [vmem:[%s1227_s2] sm:$0x3] %v471_v50  ;;  %v732_v19 = vld [vmem:[#allocation2 + $0x2b8] sm:$0xff] }
 0x34e   :  { %v475_v53 = vmul.f32 %v474_v52, %v474_v52 }
 0x350   :  { %1049 = vmatmul.mubr.f32.vlgmr.msra.gmra.mxu0 %v475_v53 }
 0x351   :  { %1066 = vmatprep.mubr.msk.f32.mxu0 %vm1106_vm0, %v1105_v41  ;;  %1059 = vmatpush3.msra.mxu0 %v734_v58 }
 0x352   :  { %1060 = vmatprep.subr.mxu0 %v1105_v41 }
 0x353   :  { %1061 = vmatpush3.msra.mxu0 %v733_v59 }
 0x354   :  { %1062 = vmatprep.subr.mxu0 %v1105_v41 }
 0x355   :  { %1063 = vmatpush3.msra.mxu0 %v732_v19 }
 0x356   :  { %1064 = vmatprep.subr.mxu0 %v1105_v41 }
 0x357   :  { %1065 = vmatpush3.msra.mxu0 %v731_v60 }
 0x369   :  { %v574_v54 = vpop.f32.mrf.mxu1 }
 0x36b   :  { %v1015_v55 = vpop.f32.mrf.mxu1 }
 0x36d   :  { %v719_v56 = vpop.f32.mrf.mxu1 }
 0x36f   :  { %v1057_v57 = vpop.f32.mrf.mxu1 }
 0x410   :  { %v644_v61 = vpop.f32.mrf.mxu0 }
 0x411   :  { %v645_v62 = vadd.f32 %v644_v61, %v574_v54 }
 0x412   :  { %v1050_v0 = vpop.f32.mrf.mxu0 }
 0x413   :  { %v723_v1 = vadd.f32 %v719_v56, %v645_v62 }
 0x415   :  { %v729_v2 = vadd.f32 %v842_v63, %v723_v1 }
 0x417   :  { %v730_v3 = vmax.f32 %v729_v2, 0.0 }
 0x419   :  { %1067 = vmatmul.mubr.msk.f32.vlgmr.msra.gmra.mxu0 %vm238_vm2, %v730_v3 }
 0x4d9   :  { %v809_v5 = vpop.f32.mrf.mxu0 }
 0x4da   :  { %v810_v6 = vadd.f32 %v843_v4, %v809_v5 }
 0x4db   :  { %v1068_v7 = vpop.f32.mrf.mxu0 }
 0x4dc   :  { %v845_v8 = vmul.f32 -1.442695, %v810_v6 }
 0x4de   :  { %1075 = vpow2.f32 %v845_v8 }
 0x4eb   :  { %v1076_v9 = vpop.eup %1075 }
 0x4ec   :  { %v816_v10 = vadd.f32 1.0, %v1076_v9 }
 0x4ee   :  { %1077 = vrcp.f32 %v816_v10 }
 0x4fb   :  { %v1078_v41 = vpop.eup %1077 }
 0x4fc   :  { %820 = vst [vmem:[%s1227_s2 + $0x2] sm:$0x3] %v1078_v41 }
 0x4fd   :  { %831 = vsyncpa [#allocation3], 1 }

</bundles_post_ra>
